<compile_context>
chip_gen: v6e
topology: v6e:2x2x1
jax: 0.10.0
libtpu: 0.0.40
codegen_flags: <defaults>
</compile_context>

<pallas_src>
import functools

import jax
import jax.numpy as jnp
from jax.experimental import pallas as pl
from jax.experimental.pallas import tpu as pltpu


def _tucker_conv_kernel(x_ref, w1t_ref, wf_ref, o_ref, z1_ref, *, R, S, H, W, Nb):
    """Fused Tucker-2 conv for Nb batch images, channels on sublanes / spatial on lanes.

    x_ref  : (Nb, C, H*W)                 input images (original dtype), spatial on lanes
    w1t_ref: (Rc, C)                      first 1x1 projection (transposed), compute dtype
    wf_ref : (M, R*S*Rc)                  spatial core with w2 folded in, offsets flattened
    o_ref  : (Nb, M, H*W)                 full-width lane-dense output slab
                                          (wrapper keeps rows < Ho, cols < Wo)
    z1_ref : (Rc, H*W + (R-1)*W + S - 1)  VMEM scratch for the projected image (+ tail pad)
    """
    Rc = w1t_ref.shape[0]
    HW = H * W
    pad = (R - 1) * W + (S - 1)
    cdt = z1_ref.dtype

    # The padded tail is only read for output rows/cols the wrapper discards,
    # but zero it once so those over-reads are well defined.
    if pad > 0:
        z1_ref[:, HW:] = jnp.zeros((Rc, pad), dtype=cdt)

    w1t = w1t_ref[...]
    wf = wf_ref[...]

    for b in range(Nb):  # unrolled; Nb is small and static
        # 1) 1x1 projection C -> Rc on the MXU; lane dim = H*W (lane dense).
        #    Single cast of z1 to compute_dtype at its single store.
        x_b = x_ref[b].astype(cdt)
        z1_ref[:, :HW] = jnp.dot(
            w1t, x_b, preferred_element_type=jnp.float32
        ).astype(cdt)

        # 2+3) Accumulate the R*S shifted contributions straight out of z1
        #      (no p_ref scratch, no per-offset converts or masked stores);
        #      w2 is already folded into wf.  Accumulation is f32 in vregs,
        #      stored once, lane-dense (H*W cols).
        acc = None
        for idx in range(R * S):
            r, s = idx // S, idx % S
            off = r * W + s
            term = jnp.dot(
                wf[:, idx * Rc:(idx + 1) * Rc],
                z1_ref[:, off:off + HW],
                preferred_element_type=jnp.float32,
            )
            acc = term if acc is None else acc + term
        o_ref[b] = acc.astype(o_ref.dtype)


def _pick_batch_block(N, per_image_bytes, vmem_budget_bytes=16 << 20, cap=8):
    """Largest divisor of N that keeps double-buffered blocks within a VMEM budget."""
    max_nb = max(1, min(cap, vmem_budget_bytes // max(1, 2 * per_image_bytes)))
    nb = 1
    for d in range(1, min(N, max_nb) + 1):
        if N % d == 0:
            nb = d
    return nb


def tucker_conv2d(x_nchw, w1, wc, w2, *, R, S, compute_dtype=jnp.float32):
    """x_nchw: (N, C, H, W).  Returns (N, M, Ho, Wo), same dtype as the input.

    w1: (C, Rc)        first 1x1 factor
    wc: (R, S, Rc, Rm) spatial core
    w2: (Rm, M)        last 1x1 factor
    compute_dtype: dtype of the MXU operands (accumulation is always f32).
    """
    N, C, H, W = x_nchw.shape
    Rc = w1.shape[1]
    Rm, M = w2.shape
    Ho, Wo = H - R + 1, W - S + 1
    out_dtype = x_nchw.dtype
    HW = H * W

    # Weight prep (tiny, once, in XLA): fold w2 into the spatial core and
    # flatten the R*S offsets with Rc into a single contraction axis.
    w1t = jnp.transpose(w1, (1, 0)).astype(compute_dtype)          # (Rc, C)
    wf = jnp.einsum("rsab,bm->rsam", wc, w2)                        # (R, S, Rc, M)
    wf = jnp.transpose(wf.reshape(R * S * Rc, M), (1, 0))           # (M, R*S*Rc)
    wf = wf.astype(compute_dtype)

    # Keep x in its original dtype and NCHW order; only a free flatten of the
    # spatial dims so they land on the 128-lane axis.  Any cast to
    # compute_dtype happens inside the kernel (VMEM cast is ~free).
    x2 = x_nchw.reshape(N, C, HW)

    itemsize_in = jnp.dtype(x_nchw.dtype).itemsize
    itemsize_out = jnp.dtype(out_dtype).itemsize
    per_image_bytes = C * HW * itemsize_in + M * HW * itemsize_out
    Nb = _pick_batch_block(N, per_image_bytes)
    grid = (N // Nb,)

    # NOTE: for large images add an output-row grid axis with an (R-1)-row halo
    # (second "parallel" axis also feeds both v7x TensorCores) and budget the
    # blocks for v7x's 64 MiB VMEM via CompilerParams(vmem_limit_bytes=...).
    # If xprof shows exposed input DMA after batching, bump in_specs[0] to
    # pipeline_mode=pl.Buffered(3).
    kernel = functools.partial(_tucker_conv_kernel, R=R, S=S, H=H, W=W, Nb=Nb)
    out_wide = pl.pallas_call(
        kernel,
        out_shape=jax.ShapeDtypeStruct((N, M, HW), out_dtype),
        grid_spec=pltpu.PrefetchScalarGridSpec(
            num_scalar_prefetch=0,
            grid=grid,
            in_specs=[
                pl.BlockSpec((Nb, C, HW), lambda n: (n, 0, 0)),
                pl.BlockSpec((Rc, C), lambda n: (0, 0)),
                pl.BlockSpec((M, R * S * Rc), lambda n: (0, 0)),
            ],
            out_specs=pl.BlockSpec((Nb, M, HW), lambda n: (n, 0, 0)),
            scratch_shapes=[
                pltpu.VMEM((Rc, HW + (R - 1) * W + (S - 1)), compute_dtype),
            ],
        ),
        compiler_params=pltpu.CompilerParams(
            dimension_semantics=("parallel",),
        ),
    )(x2, w1t, wf)

    # The kernel writes a full H*W-wide lane-dense slab per image; only the
    # top-left Ho x Wo window of each (H, W) slab is valid conv output.  This
    # slice costs one extra HBM pass -- fuse it into the consumer when possible.
    return out_wide.reshape(N, M, H, W)[:, :, :Ho, :Wo]


def _reference(x_nchw, w1, wc, w2, *, R, S):
    """Pure-JAX reference: the same three convs via lax.conv_general_dilated."""
    dn = ("NCHW", "OIHW", "NCHW")
    k1 = jnp.transpose(w1, (1, 0))[:, :, None, None]       # (Rc, C, 1, 1)
    kc = jnp.transpose(wc, (3, 2, 0, 1))                    # (Rm, Rc, R, S)
    k2 = jnp.transpose(w2, (1, 0))[:, :, None, None]        # (M, Rm, 1, 1)
    y = jax.lax.conv_general_dilated(x_nchw, k1, (1, 1), "VALID", dimension_numbers=dn)
    y = jax.lax.conv_general_dilated(y, kc, (1, 1), "VALID", dimension_numbers=dn)
    y = jax.lax.conv_general_dilated(y, k2, (1, 1), "VALID", dimension_numbers=dn)
    return y


if __name__ == "__main__":
    # Small deterministic shapes consistent with the module's __init__.
    N, C, M = 2, 4, 8       # batch, in_channels, out_channels
    H, W = 16, 16           # spatial
    R, S = 3, 3             # kernel size
    Rc, Rm = 2, 4           # Tucker ranks (input-rank, output-rank)
    # TODO(synk): rank selection in tucker_decomp (VBMF / partial_tucker) has no
    # Pallas equivalent; the decomposed factors are supplied directly here.

    key = jax.random.PRNGKey(0)
    kx, k1, kc, k2 = jax.random.split(key, 4)
    x = jax.random.normal(kx, (N, C, H, W), dtype=jnp.float32)
    w1 = jax.random.normal(k1, (C, Rc), dtype=jnp.float32) * 0.1
    wc = jax.random.normal(kc, (R, S, Rc, Rm), dtype=jnp.float32) * 0.1
    w2 = jax.random.normal(k2, (Rm, M), dtype=jnp.float32) * 0.1

    ref = jax.block_until_ready(_reference(x, w1, wc, w2, R=R, S=S))

    # f32-operand path (default): tight check against the three-conv reference.
    out_f32 = jax.block_until_ready(
        tucker_conv2d(x, w1, wc, w2, R=R, S=S, compute_dtype=jnp.float32)
    )
    assert out_f32.shape == (N, M, H - R + 1, W - S + 1), out_f32.shape
    assert jnp.allclose(out_f32, ref, atol=5e-4, rtol=5e-4), "f32 mismatch vs reference"

    # bf16-operand fast path (f32 accumulation): loose tolerance.
    out_bf16 = jax.block_until_ready(
        tucker_conv2d(x, w1, wc, w2, R=R, S=S, compute_dtype=jnp.bfloat16)
    )
    assert out_bf16.shape == ref.shape, out_bf16.shape
    assert jnp.allclose(out_bf16, ref, atol=2e-2, rtol=2e-2), "bf16 mismatch vs reference"

    print("KERNEL_OK")
</pallas_src>

<mosaic_0001>
module attributes {stable_mosaic.version = 11 : i64} {
  func.func @_tucker_conv_kernel(%arg0: i32, %arg1: memref<2x4x256xf32, #tpu.memory_space<vmem>>, %arg2: memref<2x4xf32, #tpu.memory_space<vmem>>, %arg3: memref<8x18xf32, #tpu.memory_space<vmem>>, %arg4: memref<2x8x256xf32, #tpu.memory_space<vmem>>, %arg5: memref<2x290xf32, #tpu.memory_space<vmem>>) attributes {dimension_semantics = [#tpu.dimension_semantics<parallel>], iteration_bounds = array<i64: 1>, scalar_prefetch = 0 : i64, scratch_operands = 1 : i64, tpu.core_type = #tpu.core_type<tc>, window_params = [{transform_indices = @transform_0, window_bounds = array<i64: 2, 4, 256>}, {pipeline_mode = #tpu.pipeline_mode<synchronous>, transform_indices = @transform_1, window_bounds = array<i64: 2, 4>}, {pipeline_mode = #tpu.pipeline_mode<synchronous>, transform_indices = @transform_2, window_bounds = array<i64: 8, 18>}, {transform_indices = @transform_3, window_bounds = array<i64: 2, 8, 256>}]} {
    %cst = arith.constant 0.000000e+00 : f32
    %0 = vector.broadcast %cst : f32 to vector<2x34xf32>
    %c0 = arith.constant 0 : index
    %c256 = arith.constant 256 : index
    %1 = vector.load %arg5[%c0, %c256] : memref<2x290xf32, #tpu.memory_space<vmem>>, vector<2x34xf32>
    tpu.vector_store %arg5[%c0, %c256], %0 {strides = array<i32>} : memref<2x290xf32, #tpu.memory_space<vmem>>, vector<2x34xf32>,
    %c0_0 = arith.constant 0 : index
    %c0_1 = arith.constant 0 : index
    %2 = vector.load %arg2[%c0_0, %c0_1] : memref<2x4xf32, #tpu.memory_space<vmem>>, vector<2x4xf32>
    %c0_2 = arith.constant 0 : index
    %c0_3 = arith.constant 0 : index
    %3 = vector.load %arg3[%c0_2, %c0_3] : memref<8x18xf32, #tpu.memory_space<vmem>>, vector<8x18xf32>
    %c0_4 = arith.constant 0 : index
    %c0_5 = arith.constant 0 : index
    %c0_6 = arith.constant 0 : index
    %4 = vector.load %arg1[%c0_4, %c0_5, %c0_6] : memref<2x4x256xf32, #tpu.memory_space<vmem>>, vector<1x4x256xf32>
    %5 = vector.shape_cast %4 : vector<1x4x256xf32> to vector<4x256xf32>
    %cst_7 = arith.constant dense<0.000000e+00> : vector<2x256xf32>
    %6 = tpu.matmul %2, %5, %cst_7 {dimension_numbers = #tpu.dot_dimension_numbers<[1], [0], [0], [1], [0, 0, 1, 1], [], []>} : vector<2x4xf32>, vector<4x256xf32>, vector<2x256xf32> -> vector<2x256xf32>
    %c0_8 = arith.constant 0 : index
    %c0_9 = arith.constant 0 : index
    %7 = vector.load %arg5[%c0_8, %c0_9] : memref<2x290xf32, #tpu.memory_space<vmem>>, vector<2x256xf32>
    tpu.vector_store %arg5[%c0_8, %c0_9], %6 {strides = array<i32>} : memref<2x290xf32, #tpu.memory_space<vmem>>, vector<2x256xf32>,
    %8 = vector.extract_strided_slice %3 {offsets = [0, 0], sizes = [8, 2], strides = [1, 1]} : vector<8x18xf32> to vector<8x2xf32>
    %c0_10 = arith.constant 0 : index
    %c0_11 = arith.constant 0 : index
    %9 = vector.load %arg5[%c0_10, %c0_11] : memref<2x290xf32, #tpu.memory_space<vmem>>, vector<2x256xf32>
    %cst_12 = arith.constant dense<0.000000e+00> : vector<8x256xf32>
    %10 = tpu.matmul %8, %9, %cst_12 {dimension_numbers = #tpu.dot_dimension_numbers<[1], [0], [0], [1], [0, 0, 1, 1], [], []>} : vector<8x2xf32>, vector<2x256xf32>, vector<8x256xf32> -> vector<8x256xf32>
    %11 = vector.extract_strided_slice %3 {offsets = [0, 2], sizes = [8, 2], strides = [1, 1]} : vector<8x18xf32> to vector<8x2xf32>
    %c0_13 = arith.constant 0 : index
    %c1 = arith.constant 1 : index
    %12 = vector.load %arg5[%c0_13, %c1] : memref<2x290xf32, #tpu.memory_space<vmem>>, vector<2x256xf32>
    %cst_14 = arith.constant dense<0.000000e+00> : vector<8x256xf32>
    %13 = tpu.matmul %11, %12, %cst_14 {dimension_numbers = #tpu.dot_dimension_numbers<[1], [0], [0], [1], [0, 0, 1, 1], [], []>} : vector<8x2xf32>, vector<2x256xf32>, vector<8x256xf32> -> vector<8x256xf32>
    %14 = arith.addf %10, %13 : vector<8x256xf32>
    %15 = vector.extract_strided_slice %3 {offsets = [0, 4], sizes = [8, 2], strides = [1, 1]} : vector<8x18xf32> to vector<8x2xf32>
    %c0_15 = arith.constant 0 : index
    %c2 = arith.constant 2 : index
    %16 = vector.load %arg5[%c0_15, %c2] : memref<2x290xf32, #tpu.memory_space<vmem>>, vector<2x256xf32>
    %cst_16 = arith.constant dense<0.000000e+00> : vector<8x256xf32>
    %17 = tpu.matmul %15, %16, %cst_16 {dimension_numbers = #tpu.dot_dimension_numbers<[1], [0], [0], [1], [0, 0, 1, 1], [], []>} : vector<8x2xf32>, vector<2x256xf32>, vector<8x256xf32> -> vector<8x256xf32>
    %18 = arith.addf %14, %17 : vector<8x256xf32>
    %19 = vector.extract_strided_slice %3 {offsets = [0, 6], sizes = [8, 2], strides = [1, 1]} : vector<8x18xf32> to vector<8x2xf32>
    %c0_17 = arith.constant 0 : index
    %c16 = arith.constant 16 : index
    %20 = vector.load %arg5[%c0_17, %c16] : memref<2x290xf32, #tpu.memory_space<vmem>>, vector<2x256xf32>
    %cst_18 = arith.constant dense<0.000000e+00> : vector<8x256xf32>
    %21 = tpu.matmul %19, %20, %cst_18 {dimension_numbers = #tpu.dot_dimension_numbers<[1], [0], [0], [1], [0, 0, 1, 1], [], []>} : vector<8x2xf32>, vector<2x256xf32>, vector<8x256xf32> -> vector<8x256xf32>
    %22 = arith.addf %18, %21 : vector<8x256xf32>
    %23 = vector.extract_strided_slice %3 {offsets = [0, 8], sizes = [8, 2], strides = [1, 1]} : vector<8x18xf32> to vector<8x2xf32>
    %c0_19 = arith.constant 0 : index
    %c17 = arith.constant 17 : index
    %24 = vector.load %arg5[%c0_19, %c17] : memref<2x290xf32, #tpu.memory_space<vmem>>, vector<2x256xf32>
    %cst_20 = arith.constant dense<0.000000e+00> : vector<8x256xf32>
    %25 = tpu.matmul %23, %24, %cst_20 {dimension_numbers = #tpu.dot_dimension_numbers<[1], [0], [0], [1], [0, 0, 1, 1], [], []>} : vector<8x2xf32>, vector<2x256xf32>, vector<8x256xf32> -> vector<8x256xf32>
    %26 = arith.addf %22, %25 : vector<8x256xf32>
    %27 = vector.extract_strided_slice %3 {offsets = [0, 10], sizes = [8, 2], strides = [1, 1]} : vector<8x18xf32> to vector<8x2xf32>
    %c0_21 = arith.constant 0 : index
    %c18 = arith.constant 18 : index
    %28 = vector.load %arg5[%c0_21, %c18] : memref<2x290xf32, #tpu.memory_space<vmem>>, vector<2x256xf32>
    %cst_22 = arith.constant dense<0.000000e+00> : vector<8x256xf32>
    %29 = tpu.matmul %27, %28, %cst_22 {dimension_numbers = #tpu.dot_dimension_numbers<[1], [0], [0], [1], [0, 0, 1, 1], [], []>} : vector<8x2xf32>, vector<2x256xf32>, vector<8x256xf32> -> vector<8x256xf32>
    %30 = arith.addf %26, %29 : vector<8x256xf32>
    %31 = vector.extract_strided_slice %3 {offsets = [0, 12], sizes = [8, 2], strides = [1, 1]} : vector<8x18xf32> to vector<8x2xf32>
    %c0_23 = arith.constant 0 : index
    %c32 = arith.constant 32 : index
    %32 = vector.load %arg5[%c0_23, %c32] : memref<2x290xf32, #tpu.memory_space<vmem>>, vector<2x256xf32>
    %cst_24 = arith.constant dense<0.000000e+00> : vector<8x256xf32>
    %33 = tpu.matmul %31, %32, %cst_24 {dimension_numbers = #tpu.dot_dimension_numbers<[1], [0], [0], [1], [0, 0, 1, 1], [], []>} : vector<8x2xf32>, vector<2x256xf32>, vector<8x256xf32> -> vector<8x256xf32>
    %34 = arith.addf %30, %33 : vector<8x256xf32>
    %35 = vector.extract_strided_slice %3 {offsets = [0, 14], sizes = [8, 2], strides = [1, 1]} : vector<8x18xf32> to vector<8x2xf32>
    %c0_25 = arith.constant 0 : index
    %c33 = arith.constant 33 : index
    %36 = vector.load %arg5[%c0_25, %c33] : memref<2x290xf32, #tpu.memory_space<vmem>>, vector<2x256xf32>
    %cst_26 = arith.constant dense<0.000000e+00> : vector<8x256xf32>
    %37 = tpu.matmul %35, %36, %cst_26 {dimension_numbers = #tpu.dot_dimension_numbers<[1], [0], [0], [1], [0, 0, 1, 1], [], []>} : vector<8x2xf32>, vector<2x256xf32>, vector<8x256xf32> -> vector<8x256xf32>
    %38 = arith.addf %34, %37 : vector<8x256xf32>
    %39 = vector.extract_strided_slice %3 {offsets = [0, 16], sizes = [8, 2], strides = [1, 1]} : vector<8x18xf32> to vector<8x2xf32>
    %c0_27 = arith.constant 0 : index
    %c34 = arith.constant 34 : index
    %40 = vector.load %arg5[%c0_27, %c34] : memref<2x290xf32, #tpu.memory_space<vmem>>, vector<2x256xf32>
    %cst_28 = arith.constant dense<0.000000e+00> : vector<8x256xf32>
    %41 = tpu.matmul %39, %40, %cst_28 {dimension_numbers = #tpu.dot_dimension_numbers<[1], [0], [0], [1], [0, 0, 1, 1], [], []>} : vector<8x2xf32>, vector<2x256xf32>, vector<8x256xf32> -> vector<8x256xf32>
    %42 = arith.addf %38, %41 : vector<8x256xf32>
    %c0_29 = arith.constant 0 : index
    %c0_30 = arith.constant 0 : index
    %c0_31 = arith.constant 0 : index
    %43 = vector.load %arg4[%c0_29, %c0_30, %c0_31] : memref<2x8x256xf32, #tpu.memory_space<vmem>>, vector<1x8x256xf32>
    %44 = vector.shape_cast %43 : vector<1x8x256xf32> to vector<8x256xf32>
    %45 = vector.shape_cast %42 : vector<8x256xf32> to vector<1x8x256xf32>
    tpu.vector_store %arg4[%c0_29, %c0_30, %c0_31], %45 {strides = array<i32>} : memref<2x8x256xf32, #tpu.memory_space<vmem>>, vector<1x8x256xf32>,
    %c1_32 = arith.constant 1 : index
    %c0_33 = arith.constant 0 : index
    %c0_34 = arith.constant 0 : index
    %46 = vector.load %arg1[%c1_32, %c0_33, %c0_34] : memref<2x4x256xf32, #tpu.memory_space<vmem>>, vector<1x4x256xf32>
    %47 = vector.shape_cast %46 : vector<1x4x256xf32> to vector<4x256xf32>
    %cst_35 = arith.constant dense<0.000000e+00> : vector<2x256xf32>
    %48 = tpu.matmul %2, %47, %cst_35 {dimension_numbers = #tpu.dot_dimension_numbers<[1], [0], [0], [1], [0, 0, 1, 1], [], []>} : vector<2x4xf32>, vector<4x256xf32>, vector<2x256xf32> -> vector<2x256xf32>
    %c0_36 = arith.constant 0 : index
    %c0_37 = arith.constant 0 : index
    %49 = vector.load %arg5[%c0_36, %c0_37] : memref<2x290xf32, #tpu.memory_space<vmem>>, vector<2x256xf32>
    tpu.vector_store %arg5[%c0_36, %c0_37], %48 {strides = array<i32>} : memref<2x290xf32, #tpu.memory_space<vmem>>, vector<2x256xf32>,
    %50 = vector.extract_strided_slice %3 {offsets = [0, 0], sizes = [8, 2], strides = [1, 1]} : vector<8x18xf32> to vector<8x2xf32>
    %c0_38 = arith.constant 0 : index
    %c0_39 = arith.constant 0 : index
    %51 = vector.load %arg5[%c0_38, %c0_39] : memref<2x290xf32, #tpu.memory_space<vmem>>, vector<2x256xf32>
    %cst_40 = arith.constant dense<0.000000e+00> : vector<8x256xf32>
    %52 = tpu.matmul %50, %51, %cst_40 {dimension_numbers = #tpu.dot_dimension_numbers<[1], [0], [0], [1], [0, 0, 1, 1], [], []>} : vector<8x2xf32>, vector<2x256xf32>, vector<8x256xf32> -> vector<8x256xf32>
    %53 = vector.extract_strided_slice %3 {offsets = [0, 2], sizes = [8, 2], strides = [1, 1]} : vector<8x18xf32> to vector<8x2xf32>
    %c0_41 = arith.constant 0 : index
    %c1_42 = arith.constant 1 : index
    %54 = vector.load %arg5[%c0_41, %c1_42] : memref<2x290xf32, #tpu.memory_space<vmem>>, vector<2x256xf32>
    %cst_43 = arith.constant dense<0.000000e+00> : vector<8x256xf32>
    %55 = tpu.matmul %53, %54, %cst_43 {dimension_numbers = #tpu.dot_dimension_numbers<[1], [0], [0], [1], [0, 0, 1, 1], [], []>} : vector<8x2xf32>, vector<2x256xf32>, vector<8x256xf32> -> vector<8x256xf32>
    %56 = arith.addf %52, %55 : vector<8x256xf32>
    %57 = vector.extract_strided_slice %3 {offsets = [0, 4], sizes = [8, 2], strides = [1, 1]} : vector<8x18xf32> to vector<8x2xf32>
    %c0_44 = arith.constant 0 : index
    %c2_45 = arith.constant 2 : index
    %58 = vector.load %arg5[%c0_44, %c2_45] : memref<2x290xf32, #tpu.memory_space<vmem>>, vector<2x256xf32>
    %cst_46 = arith.constant dense<0.000000e+00> : vector<8x256xf32>
    %59 = tpu.matmul %57, %58, %cst_46 {dimension_numbers = #tpu.dot_dimension_numbers<[1], [0], [0], [1], [0, 0, 1, 1], [], []>} : vector<8x2xf32>, vector<2x256xf32>, vector<8x256xf32> -> vector<8x256xf32>
    %60 = arith.addf %56, %59 : vector<8x256xf32>
    %61 = vector.extract_strided_slice %3 {offsets = [0, 6], sizes = [8, 2], strides = [1, 1]} : vector<8x18xf32> to vector<8x2xf32>
    %c0_47 = arith.constant 0 : index
    %c16_48 = arith.constant 16 : index
    %62 = vector.load %arg5[%c0_47, %c16_48] : memref<2x290xf32, #tpu.memory_space<vmem>>, vector<2x256xf32>
    %cst_49 = arith.constant dense<0.000000e+00> : vector<8x256xf32>
    %63 = tpu.matmul %61, %62, %cst_49 {dimension_numbers = #tpu.dot_dimension_numbers<[1], [0], [0], [1], [0, 0, 1, 1], [], []>} : vector<8x2xf32>, vector<2x256xf32>, vector<8x256xf32> -> vector<8x256xf32>
    %64 = arith.addf %60, %63 : vector<8x256xf32>
    %65 = vector.extract_strided_slice %3 {offsets = [0, 8], sizes = [8, 2], strides = [1, 1]} : vector<8x18xf32> to vector<8x2xf32>
    %c0_50 = arith.constant 0 : index
    %c17_51 = arith.constant 17 : index
    %66 = vector.load %arg5[%c0_50, %c17_51] : memref<2x290xf32, #tpu.memory_space<vmem>>, vector<2x256xf32>
    %cst_52 = arith.constant dense<0.000000e+00> : vector<8x256xf32>
    %67 = tpu.matmul %65, %66, %cst_52 {dimension_numbers = #tpu.dot_dimension_numbers<[1], [0], [0], [1], [0, 0, 1, 1], [], []>} : vector<8x2xf32>, vector<2x256xf32>, vector<8x256xf32> -> vector<8x256xf32>
    %68 = arith.addf %64, %67 : vector<8x256xf32>
    %69 = vector.extract_strided_slice %3 {offsets = [0, 10], sizes = [8, 2], strides = [1, 1]} : vector<8x18xf32> to vector<8x2xf32>
    %c0_53 = arith.constant 0 : index
    %c18_54 = arith.constant 18 : index
    %70 = vector.load %arg5[%c0_53, %c18_54] : memref<2x290xf32, #tpu.memory_space<vmem>>, vector<2x256xf32>
    %cst_55 = arith.constant dense<0.000000e+00> : vector<8x256xf32>
    %71 = tpu.matmul %69, %70, %cst_55 {dimension_numbers = #tpu.dot_dimension_numbers<[1], [0], [0], [1], [0, 0, 1, 1], [], []>} : vector<8x2xf32>, vector<2x256xf32>, vector<8x256xf32> -> vector<8x256xf32>
    %72 = arith.addf %68, %71 : vector<8x256xf32>
    %73 = vector.extract_strided_slice %3 {offsets = [0, 12], sizes = [8, 2], strides = [1, 1]} : vector<8x18xf32> to vector<8x2xf32>
    %c0_56 = arith.constant 0 : index
    %c32_57 = arith.constant 32 : index
    %74 = vector.load %arg5[%c0_56, %c32_57] : memref<2x290xf32, #tpu.memory_space<vmem>>, vector<2x256xf32>
    %cst_58 = arith.constant dense<0.000000e+00> : vector<8x256xf32>
    %75 = tpu.matmul %73, %74, %cst_58 {dimension_numbers = #tpu.dot_dimension_numbers<[1], [0], [0], [1], [0, 0, 1, 1], [], []>} : vector<8x2xf32>, vector<2x256xf32>, vector<8x256xf32> -> vector<8x256xf32>
    %76 = arith.addf %72, %75 : vector<8x256xf32>
    %77 = vector.extract_strided_slice %3 {offsets = [0, 14], sizes = [8, 2], strides = [1, 1]} : vector<8x18xf32> to vector<8x2xf32>
    %c0_59 = arith.constant 0 : index
    %c33_60 = arith.constant 33 : index
    %78 = vector.load %arg5[%c0_59, %c33_60] : memref<2x290xf32, #tpu.memory_space<vmem>>, vector<2x256xf32>
    %cst_61 = arith.constant dense<0.000000e+00> : vector<8x256xf32>
    %79 = tpu.matmul %77, %78, %cst_61 {dimension_numbers = #tpu.dot_dimension_numbers<[1], [0], [0], [1], [0, 0, 1, 1], [], []>} : vector<8x2xf32>, vector<2x256xf32>, vector<8x256xf32> -> vector<8x256xf32>
    %80 = arith.addf %76, %79 : vector<8x256xf32>
    %81 = vector.extract_strided_slice %3 {offsets = [0, 16], sizes = [8, 2], strides = [1, 1]} : vector<8x18xf32> to vector<8x2xf32>
    %c0_62 = arith.constant 0 : index
    %c34_63 = arith.constant 34 : index
    %82 = vector.load %arg5[%c0_62, %c34_63] : memref<2x290xf32, #tpu.memory_space<vmem>>, vector<2x256xf32>
    %cst_64 = arith.constant dense<0.000000e+00> : vector<8x256xf32>
    %83 = tpu.matmul %81, %82, %cst_64 {dimension_numbers = #tpu.dot_dimension_numbers<[1], [0], [0], [1], [0, 0, 1, 1], [], []>} : vector<8x2xf32>, vector<2x256xf32>, vector<8x256xf32> -> vector<8x256xf32>
    %84 = arith.addf %80, %83 : vector<8x256xf32>
    %c1_65 = arith.constant 1 : index
    %c0_66 = arith.constant 0 : index
    %c0_67 = arith.constant 0 : index
    %85 = vector.load %arg4[%c1_65, %c0_66, %c0_67] : memref<2x8x256xf32, #tpu.memory_space<vmem>>, vector<1x8x256xf32>
    %86 = vector.shape_cast %85 : vector<1x8x256xf32> to vector<8x256xf32>
    %87 = vector.shape_cast %84 : vector<8x256xf32> to vector<1x8x256xf32>
    tpu.vector_store %arg4[%c1_65, %c0_66, %c0_67], %87 {strides = array<i32>} : memref<2x8x256xf32, #tpu.memory_space<vmem>>, vector<1x8x256xf32>,
    return
  }
  func.func @transform_0(%arg0: i32) -> (i32, i32, i32) {
    %c0_i32 = arith.constant 0 : i32
    %c0_i32_0 = arith.constant 0 : i32
    %c0_i32_1 = arith.constant 0 : i32
    return %arg0, %c0_i32, %c0_i32_0 : i32, i32, i32
  }
  func.func @transform_1(%arg0: i32) -> (i32, i32) {
    %c0_i32 = arith.constant 0 : i32
    %c0_i32_0 = arith.constant 0 : i32
    %c0_i32_1 = arith.constant 0 : i32
    return %c0_i32, %c0_i32_0 : i32, i32
  }
  func.func @transform_2(%arg0: i32) -> (i32, i32) {
    %c0_i32 = arith.constant 0 : i32
    %c0_i32_0 = arith.constant 0 : i32
    %c0_i32_1 = arith.constant 0 : i32
    return %c0_i32, %c0_i32_0 : i32, i32
  }
  func.func @transform_3(%arg0: i32) -> (i32, i32, i32) {
    %c0_i32 = arith.constant 0 : i32
    %c0_i32_0 = arith.constant 0 : i32
    %c0_i32_1 = arith.constant 0 : i32
    return %arg0, %c0_i32, %c0_i32_0 : i32, i32, i32
  }
}

</mosaic_0001>

<bundles_post_ra>
// kernel: tpu_custom_call.1
= control target key start
LH: loop header
LB: loop body
LE: loop exit
PB: predicated region body
PF: predicated region fallthrough
CT: control target
= control target key end

     0   :  { %8 = vsyncpa [#allocation4], 0  ;;  %s2643_s0 = inlined_call_operand.hbm [shape: f32[2,4,256], index: 0, kind: input, shape index: {}]   ;;  %s2644_s1 = inlined_call_operand.hbm [shape: f32[2,4], index: 1, kind: input, shape index: {}]   ;;  %s2645_s2 = inlined_call_operand.hbm [shape: f32[8,18], index: 2, kind: input, shape index: {}]   ;;  %s2646_s3 = inlined_call_operand.hbm [shape: f32[2,8,256], index: 3, kind: output, shape index: {}]  }
   0x1   :  { %9 = vsyncpa [#allocation7], 0 }
   0x2   :  { %10 = vsyncpa [#allocation5], 0  ;;  %s2316_s12 = smov [#allocation6]   ;;  %s2317_s14 = smov [#allocation3]  }
   0x3   :  { %s29_s13 = sshll.u32 %s2316_s12, 4  ;;  %s16_s15 = sshll.u32 %s2317_s14, 4  ;;  %s30_s13 = int_to_ptr.vmem [resolvable:$true] %s29_s13  ;;  %s17_s15 = int_to_ptr.vmem [resolvable:$true] %s16_s15 }
   0x4   :  { %s2238_s16 = scalar_lea.vmem %s30_s13, 32  ;;  %p2243_p1 = scmp.lt.s32.totalorder %s30_s13, %s30_s13 }
   0x5   :  { %p2239_p0 = scmp.ne.s32.totalorder %s30_s13, %s2238_s16  ;;  %p2244_p2 = scmp.lt.s32.totalorder %s2238_s16, %s2238_s16 }
   0x7   :  { %p2245_p3 = por %p2244_p2, %p2243_p1 }
   0x9   :  { %p2246_p4 = pnand %p2245_p3, %p2239_p0 }
   0xb   :  { %2249 = shalt.err (!%p2246_p4)
}
   0xc   :  { %32 = dma.hbm_to_vmem [thread:$0]  %s2644_s1, 32, %s30_s13, [#allocation7]  }
   0xd   :  { %s2258_s19 = scalar_lea.vmem %s17_s15, 256  ;;  %p2263_p6 = scmp.lt.s32.totalorder %s17_s15, %s17_s15 }
   0xe   :  { %p2259_p5 = scmp.ne.s32.totalorder %s17_s15, %s2258_s19  ;;  %p2264_p7 = scmp.lt.s32.totalorder %s2258_s19, %s2258_s19 }
  0x10   :  { %p2265_p8 = por %p2264_p7, %p2263_p6 }
  0x12   :  { %p2266_p9 = pnand %p2265_p8, %p2259_p5 }
  0x14   :  { %2269 = shalt.err (!%p2266_p9)
}
  0x15   :  { %s2318_s20 = smov 128   ;;  %s2319_s21 = smov 8  }
  0x16   :  { %22 = dma.hbm_to_vmem [thread:$0]  %s2643_s0, 256, %s17_s15, [#allocation4], %s2318_s20, %s2318_s20, %s2319_s21  }
  0x17   :  { %s2320_s24 = smov [#allocation8]  }
  0x18   :  { %s39_s25 = sshll.u32 %s2320_s24, 4  ;;  %s40_s25 = int_to_ptr.vmem [resolvable:$true] %s39_s25 }
  0x19   :  { %s2278_s26 = scalar_lea.vmem %s40_s25, 128  ;;  %p2283_p11 = scmp.lt.s32.totalorder %s40_s25, %s40_s25 }
  0x1a   :  { %p2279_p10 = scmp.ne.s32.totalorder %s40_s25, %s2278_s26  ;;  %p2284_p12 = scmp.lt.s32.totalorder %s2278_s26, %s2278_s26 }
  0x1c   :  { %p2285_p13 = por %p2284_p12, %p2283_p11 }
  0x1e   :  { %p2286_p0 = pnand %p2285_p13, %p2279_p10 }
  0x20   :  { %2289 = shalt.err (!%p2286_p0)
}
  0x21   :  { %42 = dma.hbm_to_vmem [thread:$0]  %s2645_s2, 128, %s40_s25, [#allocation7]  }
  0x22   :  { %2310 = dma.done.wait [#allocation4], 256  }
  0x23   :  { %2311 = vsyncadd [#allocation4], 4294967040 }
  0x24   :  { %2312 = dma.done.wait [#allocation7], 160  }
  0x25   :  { %2313 = vsyncadd [#allocation7], 4294967136  ;;  %v2321_v0 = vmov 0.0   ;;  %v56_v1 = vld [vmem:[#allocation3] sm:$0xff]  ;;  %vm63_vm0 = vcmask 1043456   ;;  %vm59_vm1 = vcmask 31744   ;;  %v161_v8 = vlaneseq }
  0x26   :  { %132 = vmatprep.mubr.f32.mxu0 %v2321_v0  ;;  %254 = vmatprep.mubr.f32.mxu1 %v2321_v0  ;;  %v58_v2 = vcombine.high %v56_v1, %v56_v1  ;;  %v2371_v3 = vld [vmem:[#allocation6] sm:$0x3]  ;;  %vm52_vm2 = vcmask 271360   ;;  %v2378_v4 = vld [vmem:[#allocation8] sm:$0xff]  ;;  %s2322_s0 = smov 122   ;;  %s2323_s2 = smov 118  }
  0x27   :  { %53 = vst.msk [vmem:[#allocation2 + $0x4] sm:$0x3] %vm52_vm2, %v2321_v0  ;;  %456 = vrot.lane.b32.xlu1 %v2378_v4, %s2322_s0  ;;  %v2324_v6 = vmov 1983009808   ;;  %v162_v12 = vshrl.u32 %v161_v8, 7  ;;  %vm185_vm3 = vcmask 1041408  }
  0x28   :  { %2124 = vmatprep.subr.msk.mxu0 %vm63_vm0, %v58_v2  ;;  %v159_v7 = vunpack.c.l.s4 %v2324_v6  ;;  %vm182_vm4 = vcmask 15360   ;;  %s2325_s28 = smov 110   ;;  %s2326_s29 = smov 112   ;;  %vm481_vm5 = vcmask 916480   ;;  %vm697_vm6 = vcmask 900096  }
  0x29   :  { %2125 = vmatpush1.msk.msra.mxu0 %vm63_vm0, %v56_v1  ;;  %s2327_s30 = smov 95   ;;  %s2328_s4 = smov 114   ;;  %vm913_vm7 = vcmask 777216   ;;  %vm179_vm8 = vcmask 1039360   ;;  %vm373_vm9 = vcmask 1031168   ;;  %vm589_vm10 = vcmask 908288  }
  0x2a   :  { %2126 = vmatmul.mubr.msk.f32.vlgmr.msra.gmra.mxu0 %vm59_vm1, %v2371_v3  ;;  %v160_v11 = vunpack.c.0.s8 %v159_v7  ;;  %s2329_s5 = smov 126   ;;  %s2330_s6 = smov 124   ;;  %vm805_vm11 = vcmask 785408   ;;  %vm1021_vm12 = vcmask 769024  }
  0x2b   :  { %340 = vmatprep.mubr.f32.mxu0 %v2321_v0  ;;  %672 = vrot.lane.b32.xlu1 %v2378_v4, %s2323_s2  ;;  %s2331_s7 = smov 127   ;;  %s2332_s8 = smov 120  }
  0x2c   :  { %v2383_v13 = vsub.s32 %v160_v11, %v162_v12  ;;  %s2333_s9 = smov 116   ;;  %s2334_s10 = smov 111  }
  0x2d   :  { %s2335_s11 = smov 96   ;;  %s2336_s12 = smov 94  }
  0x2e   :  { %s2337_s13 = smov [#allocation9]  }
  0x2f   :  { %s2111_s14 = sshll.u32 %s2337_s13, 4  ;;  %s2112_s14 = int_to_ptr.vmem [resolvable:$true] %s2111_s14 }
  0x30   :  { %s2290_s15 = scalar_lea.vmem %s2112_s14, 512  ;;  %p2295_p2 = scmp.lt.s32.totalorder %s2112_s14, %s2112_s14 }
  0x31   :  { %p2291_p1 = scmp.ne.s32.totalorder %s2112_s14, %s2290_s15  ;;  %p2296_p3 = scmp.lt.s32.totalorder %s2290_s15, %s2290_s15 }
  0x33   :  { %p2297_p4 = por %p2296_p3, %p2295_p2 }
  0x35   :  { %p2298_p5 = pnand %p2297_p4, %p2291_p1 }
  0x99   :  { %v2438_v56 = vpop.permute.xlu1 %456 }
  0x9d   :  { %v2440_v57 = vpop.permute.xlu1 %672 }
  0xea   :  { %v134_v5 = vpop.f32.mrf.mxu0 }
  0xec   :  { %v136_v9 = vpop.f32.mrf.mxu0 }
  0xed   :  { %v141_v10 = vcombine.low %v134_v5, %v136_v9 }
  0xef   :  { %2127 = vst.sshfl [vmem:[#allocation2] sm:$0x33 pattern:$0x76325410] %v141_v10  ;;  %v1106_v10 = vld [vmem:[#allocation3 + $0x8] sm:$0xff] }
  0xf6   :  { %v2131_v14 = vld.sshfl [vmem:[#allocation2] sm:$0x33 pattern:$0x76325410] }
  0xf7   :  { %v671_v15 = vld [vmem:[#allocation2] sm:$0x3f]  ;;  %v269_v16 = vcombine.high %v2131_v14, %v2131_v14 }
  0xf8   :  { %v682_v17 = vrot.slane %v671_v15, %v2383_v13  ;;  %v455_v18 = vld [vmem:[#allocation2] sm:$0x3f]  ;;  %v675_v20 = vcombine.high %v671_v15, %v671_v15 }
  0xf9   :  { %v466_v19 = vrot.slane %v455_v18, %v2383_v13  ;;  %2132 = vmatprep.subr.msk.mxu0 %vm185_vm3, %v269_v16  ;;  %v887_v21 = vld [vmem:[#allocation2] sm:$0x3f]  ;;  %v459_v23 = vcombine.high %v455_v18, %v455_v18 }
  0xfa   :  { %691 = vrot.lane.b32.xlu0 %v682_v17, %s2325_s28  ;;  %2133 = vmatpush1.msk.msra.mxu0 %vm185_vm3, %v2131_v14  ;;  %v689_v24 = vrot.slane %v675_v20, %v2383_v13  ;;  %v891_v25 = vcombine.high %v887_v21, %v887_v21  ;;  %v690_v28 = vcombine.high %v682_v17, %v682_v17  ;;  %v152_v31 = vld [vmem:[#allocation2] sm:$0x3f] }
  0xfb   :  { %475 = vrot.lane.b32.xlu1 %v466_v19, %s2326_s29  ;;  %v474_v22 = vcombine.high %v466_v19, %v466_v19  ;;  %2134 = vmatmul.mubr.msk.f32.vlgmr.msra.gmra.mxu0 %vm182_vm4, %v2378_v4  ;;  %v473_v26 = vrot.slane %v459_v23, %v2383_v13  ;;  %v898_v29 = vrot.slane %v887_v21, %v2383_v13  ;;  %v347_v33 = vld [vmem:[#allocation2] sm:$0x3f] }
  0xfc   :  { %554 = vmatprep.mubr.f32.mxu0 %v2321_v0  ;;  %v905_v27 = vrot.slane %v891_v25, %v2383_v13  ;;  %v164_v32 = vrot.slane %v152_v31, %v2383_v13  ;;  %v358_v34 = vrot.slane %v347_v33, %v2383_v13  ;;  %v563_v35 = vld [vmem:[#allocation2] sm:$0x3f]  ;;  %v157_v38 = vcombine.high %v152_v31, %v152_v31 }
  0xfd   :  { %v906_v30 = vcombine.high %v898_v29, %v898_v29  ;;  %v574_v36 = vrot.slane %v563_v35, %v2383_v13  ;;  %v779_v37 = vld [vmem:[#allocation2] sm:$0x3f]  ;;  %v351_v42 = vcombine.high %v347_v33, %v347_v33  ;;  %v567_v45 = vcombine.high %v563_v35, %v563_v35 }
  0xfe   :  { %477 = vrot.lane.b32.xlu0 %v474_v22, %s2326_s29  ;;  %v790_v39 = vrot.slane %v779_v37, %v2383_v13  ;;  %v171_v40 = vrot.slane %v157_v38, %v2383_v13  ;;  %v995_v41 = vld [vmem:[#allocation2] sm:$0x3f]  ;;  %v172_v46 = vcombine.high %v164_v32, %v164_v32  ;;  %v783_v48 = vcombine.high %v779_v37, %v779_v37 }
  0xff   :  { %695 = vrot.lane.b32.xlu1 %v689_v24, %s2325_s28  ;;  %v1006_v43 = vrot.slane %v995_v41, %v2383_v13  ;;  %v365_v44 = vrot.slane %v351_v42, %v2383_v13  ;;  %v581_v47 = vrot.slane %v567_v45, %v2383_v13  ;;  %v366_v49 = vcombine.high %v358_v34, %v358_v34 }
 0x100   :  { %v797_v50 = vrot.slane %v783_v48, %v2383_v13  ;;  %v999_v51 = vcombine.high %v995_v41, %v995_v41  ;;  %v582_v52 = vcombine.high %v574_v36, %v574_v36  ;;  %v798_v54 = vcombine.high %v790_v39, %v790_v39 }
 0x101   :  { %v1014_v55 = vcombine.high %v1006_v43, %v1006_v43  ;;  %v1108_v14 = vcombine.high %v1106_v10, %v1106_v10 }
 0x102   :  { %479 = vrot.lane.b32.xlu0 %v473_v26, %s2326_s29  ;;  %v1013_v53 = vrot.slane %v999_v51, %v2383_v13 }
 0x103   :  { %911 = vrot.lane.b32.xlu1 %v905_v27, %s2327_s30 }
 0x106   :  { %693 = vrot.lane.b32.xlu0 %v690_v28, %s2325_s28 }
 0x107   :  { %888 = vrot.lane.b32.xlu1 %v2378_v4, %s2328_s4 }
 0x10a   :  { %909 = vrot.lane.b32.xlu0 %v906_v30, %s2327_s30 }
 0x10b   :  { %154 = vrot.lane.b32.xlu1 %v2378_v4, %s2329_s5 }
 0x10e   :  { %907 = vrot.lane.b32.xlu0 %v898_v29, %s2327_s30 }
 0x10f   :  { %348 = vrot.lane.b32.xlu1 %v2378_v4, %s2330_s6 }
 0x112   :  { %173 = vrot.lane.b32.xlu0 %v164_v32, %s2331_s7 }
 0x113   :  { %564 = vrot.lane.b32.xlu1 %v2378_v4, %s2332_s8 }
 0x116   :  { %367 = vrot.lane.b32.xlu0 %v358_v34, %s2329_s5 }
 0x117   :  { %780 = vrot.lane.b32.xlu1 %v2378_v4, %s2333_s9 }
 0x11a   :  { %583 = vrot.lane.b32.xlu0 %v574_v36, %s2334_s10 }
 0x11b   :  { %996 = vrot.lane.b32.xlu1 %v2378_v4, %s2326_s29 }
 0x11e   :  { %799 = vrot.lane.b32.xlu0 %v790_v39, %s2335_s11 }
 0x11f   :  { %177 = vrot.lane.b32.xlu1 %v171_v40, %s2331_s7 }
 0x122   :  { %1015 = vrot.lane.b32.xlu0 %v1006_v43, %s2336_s12 }
 0x123   :  { %371 = vrot.lane.b32.xlu1 %v365_v44, %s2329_s5 }
 0x126   :  { %175 = vrot.lane.b32.xlu0 %v172_v46, %s2331_s7 }
 0x127   :  { %587 = vrot.lane.b32.xlu1 %v581_v47, %s2334_s10 }
 0x12a   :  { %369 = vrot.lane.b32.xlu0 %v366_v49, %s2329_s5 }
 0x12b   :  { %803 = vrot.lane.b32.xlu1 %v797_v50, %s2335_s11 }
 0x12e   :  { %585 = vrot.lane.b32.xlu0 %v582_v52, %s2334_s10 }
 0x12f   :  { %1019 = vrot.lane.b32.xlu1 %v1013_v53, %s2336_s12 }
 0x132   :  { %801 = vrot.lane.b32.xlu0 %v798_v54, %s2335_s11 }
 0x136   :  { %1017 = vrot.lane.b32.xlu0 %v1014_v55, %s2336_s12 }
 0x16c   :  { %v692_v58 = vpop.permute.xlu0 %691 }
 0x16d   :  { %v476_v59 = vpop.permute.xlu1 %475 }
 0x170   :  { %v478_v60 = vpop.permute.xlu0 %477 }
 0x171   :  { %v696_v61 = vpop.permute.xlu1 %695  ;;  %v482_v2 = vsel %vm481_vm5, %v476_v59, %v478_v60 }
 0x174   :  { %v480_v62 = vpop.permute.xlu0 %479 }
 0x175   :  { %v912_v63 = vpop.permute.xlu1 %911  ;;  %v483_v1 = vsel %vm481_vm5, %v478_v60, %v480_v62 }
 0x176   :  { %2138 = vmatprep.subr.msk.mxu0 %vm185_vm3, %v483_v1 }
 0x177   :  { %2139 = vmatpush1.msk.msra.mxu0 %vm185_vm3, %v482_v2 }
 0x178   :  { %2140 = vmatmul.mubr.msk.f32.vlgmr.msra.gmra.mxu0 %vm182_vm4, %v2438_v56  ;;  %v694_v5 = vpop.permute.xlu0 %693 }
 0x179   :  { %v2448_v6 = vpop.permute.xlu1 %888  ;;  %v698_v7 = vsel %vm697_vm6, %v692_v58, %v694_v5  ;;  %v699_v8 = vsel %vm697_vm6, %v694_v5, %v696_v61  ;;  %770 = vmatprep.mubr.f32.mxu0 %v2321_v0 }
 0x17a   :  { %2144 = vmatprep.subr.msk.mxu0 %vm185_vm3, %v699_v8 }
 0x17b   :  { %2145 = vmatpush1.msk.msra.mxu0 %vm185_vm3, %v698_v7 }
 0x17c   :  { %2146 = vmatmul.mubr.msk.f32.vlgmr.msra.gmra.mxu0 %vm182_vm4, %v2440_v57  ;;  %v910_v9 = vpop.permute.xlu0 %909 }
 0x17d   :  { %v2457_v11 = vpop.permute.xlu1 %154  ;;  %v915_v12 = vsel %vm913_vm7, %v910_v9, %v912_v63  ;;  %986 = vmatprep.mubr.f32.mxu0 %v2321_v0 }
 0x17e   :  { %2150 = vmatprep.subr.msk.mxu0 %vm185_vm3, %v915_v12 }
 0x180   :  { %v908_v15 = vpop.permute.xlu0 %907 }
 0x181   :  { %v2462_v16 = vpop.permute.xlu1 %348  ;;  %v914_v17 = vsel %vm913_vm7, %v908_v15, %v910_v9 }
 0x182   :  { %2151 = vmatpush1.msk.msra.mxu0 %vm185_vm3, %v914_v17 }
 0x183   :  { %2152 = vmatmul.mubr.msk.f32.vlgmr.msra.gmra.mxu0 %vm182_vm4, %v2448_v6  ;;  %2156 = vmatprep.subr.msk.mxu0 %vm63_vm0, %v1108_v14 }
 0x184   :  { %v174_v18 = vpop.permute.xlu0 %173  ;;  %2157 = vmatpush1.msk.msra.mxu0 %vm63_vm0, %v1106_v10  ;;  %1177 = vmatprep.mubr.f32.mxu0 %v2321_v0 }
 0x185   :  { %v2471_v19 = vpop.permute.xlu1 %564 }
 0x187   :  { %2158 = vmatmul.mubr.msk.f32.vlgmr.msra.gmra.mxu0 %vm59_vm1, %v2371_v3 }
 0x188   :  { %v368_v20 = vpop.permute.xlu0 %367  ;;  %1375 = vmatprep.mubr.f32.mxu0 %v2321_v0 }
 0x189   :  { %v2476_v21 = vpop.permute.xlu1 %780 }
 0x18c   :  { %v584_v22 = vpop.permute.xlu0 %583 }
 0x18d   :  { %v2478_v23 = vpop.permute.xlu1 %996 }
 0x190   :  { %v800_v24 = vpop.permute.xlu0 %799 }
 0x191   :  { %v178_v25 = vpop.permute.xlu1 %177 }
 0x194   :  { %v1016_v26 = vpop.permute.xlu0 %1015 }
 0x195   :  { %v372_v27 = vpop.permute.xlu1 %371 }
 0x198   :  { %v176_v28 = vpop.permute.xlu0 %175 }
 0x199   :  { %v181_v29 = vsel %vm179_vm8, %v176_v28, %v178_v25  ;;  %v180_v30 = vsel %vm179_vm8, %v174_v18, %v176_v28  ;;  %v588_v3 = vpop.permute.xlu1 %587 }
 0x19a   :  { %2128 = vmatprep.subr.msk.mxu1 %vm185_vm3, %v181_v29 }
 0x19b   :  { %2129 = vmatpush1.msk.msra.mxu1 %vm185_vm3, %v180_v30 }
 0x19c   :  { %v370_v31 = vpop.permute.xlu0 %369  ;;  %2130 = vmatmul.mubr.msk.f32.vlgmr.msra.gmra.mxu1 %vm182_vm4, %v2457_v11 }
 0x19d   :  { %v374_v32 = vsel %vm373_vm9, %v368_v20, %v370_v31  ;;  %v375_v33 = vsel %vm373_vm9, %v370_v31, %v372_v27  ;;  %446 = vmatprep.mubr.f32.mxu1 %v2321_v0  ;;  %v804_v37 = vpop.permute.xlu1 %803 }
 0x19e   :  { %2135 = vmatprep.subr.msk.mxu1 %vm185_vm3, %v375_v33 }
 0x19f   :  { %2136 = vmatpush1.msk.msra.mxu1 %vm185_vm3, %v374_v32 }
 0x1a0   :  { %v586_v34 = vpop.permute.xlu0 %585  ;;  %2137 = vmatmul.mubr.msk.f32.vlgmr.msra.gmra.mxu1 %vm182_vm4, %v2462_v16 }
 0x1a1   :  { %v590_v35 = vsel %vm589_vm10, %v584_v22, %v586_v34  ;;  %v591_v36 = vsel %vm589_vm10, %v586_v34, %v588_v3  ;;  %662 = vmatprep.mubr.f32.mxu1 %v2321_v0  ;;  %v1020_v41 = vpop.permute.xlu1 %1019 }
 0x1a2   :  { %2141 = vmatprep.subr.msk.mxu1 %vm185_vm3, %v591_v36 }
 0x1a3   :  { %2142 = vmatpush1.msk.msra.mxu1 %vm185_vm3, %v590_v35 }
 0x1a4   :  { %v802_v38 = vpop.permute.xlu0 %801  ;;  %2143 = vmatmul.mubr.msk.f32.vlgmr.msra.gmra.mxu1 %vm182_vm4, %v2471_v19 }
 0x1a5   :  { %v806_v39 = vsel %vm805_vm11, %v800_v24, %v802_v38  ;;  %v807_v40 = vsel %vm805_vm11, %v802_v38, %v804_v37  ;;  %878 = vmatprep.mubr.f32.mxu1 %v2321_v0 }
 0x1a6   :  { %2147 = vmatprep.subr.msk.mxu1 %vm185_vm3, %v807_v40 }
 0x1a7   :  { %2148 = vmatpush1.msk.msra.mxu1 %vm185_vm3, %v806_v39 }
 0x1a8   :  { %v1018_v42 = vpop.permute.xlu0 %1017  ;;  %2149 = vmatmul.mubr.msk.f32.vlgmr.msra.gmra.mxu1 %vm182_vm4, %v2476_v21 }
 0x1a9   :  { %v1022_v43 = vsel %vm1021_vm12, %v1016_v26, %v1018_v42  ;;  %v1023_v44 = vsel %vm1021_vm12, %v1018_v42, %v1020_v41  ;;  %1094 = vmatprep.mubr.f32.mxu1 %v2321_v0 }
 0x1aa   :  { %2153 = vmatprep.subr.msk.mxu1 %vm185_vm3, %v1023_v44 }
 0x1ab   :  { %2154 = vmatpush1.msk.msra.mxu1 %vm185_vm3, %v1022_v43 }
 0x1ac   :  { %2155 = vmatmul.mubr.msk.f32.vlgmr.msra.gmra.mxu1 %vm182_vm4, %v2478_v23 }
 0x1ad   :  { %1291 = vmatprep.mubr.f32.mxu1 %v2321_v0 }
 0x1bb   :  { %v342_v45 = vpop.f32.mrf.mxu0 }
 0x1bd   :  { %v344_v46 = vpop.f32.mrf.mxu0 }
 0x238   :  { %v556_v47 = vpop.f32.mrf.mxu0 }
 0x23a   :  { %v558_v48 = vpop.f32.mrf.mxu0 }
 0x23c   :  { %v772_v49 = vpop.f32.mrf.mxu0 }
 0x23e   :  { %v774_v50 = vpop.f32.mrf.mxu0 }
 0x243   :  { %v2515_v51 = vpop.f32.mrf.mxu0 }
 0x245   :  { %v2517_v52 = vpop.f32.mrf.mxu0 }
 0x247   :  { %v1179_v53 = vpop.f32.mrf.mxu0 }
 0x249   :  { %v1181_v54 = vpop.f32.mrf.mxu0 }
 0x24a   :  { %v1186_v55 = vcombine.low %v1179_v53, %v1181_v54 }
 0x24c   :  { %2159 = vst.sshfl [vmem:[#allocation2] sm:$0x33 pattern:$0x76325410] %v1186_v55 }
 0x253   :  { %v2163_v58 = vld.sshfl [vmem:[#allocation2] sm:$0x33 pattern:$0x76325410] }
 0x254   :  { %v1197_v59 = vld [vmem:[#allocation2] sm:$0x3f]  ;;  %v1306_v60 = vcombine.high %v2163_v58, %v2163_v58 }
 0x255   :  { %v1206_v61 = vrot.slane %v1197_v59, %v2383_v13  ;;  %v1382_v62 = vld [vmem:[#allocation2] sm:$0x3f] }
 0x256   :  { %v1391_v63 = vrot.slane %v1382_v62, %v2383_v13  ;;  %v1485_v1 = vld [vmem:[#allocation2] sm:$0x3f]  ;;  %2164 = vmatprep.subr.msk.mxu0 %vm185_vm3, %v1306_v60  ;;  %v1384_v31 = vcombine.high %v1382_v62, %v1382_v62 }
 0x257   :  { %1215 = vrot.lane.b32.xlu0 %v1206_v61, %s2331_s7  ;;  %v2523_v2 = vld [vmem:[#allocation2] sm:$0x3f]  ;;  %2165 = vmatpush1.msk.msra.mxu0 %vm185_vm3, %v2163_v58  ;;  %v1494_v5 = vrot.slane %v1485_v1, %v2383_v13  ;;  %v1214_v3 = vcombine.high %v1206_v61, %v1206_v61  ;;  %v1487_v35 = vcombine.high %v1485_v1, %v1485_v1 }
 0x258   :  { %1400 = vrot.lane.b32.xlu1 %v1391_v63, %s2329_s5  ;;  %2166 = vmatmul.mubr.msk.f32.vlgmr.msra.gmra.mxu0 %vm182_vm4, %v2378_v4  ;;  %v1597_v7 = vrot.slane %v2523_v2, %v2383_v13  ;;  %v1691_v8 = vld [vmem:[#allocation2] sm:$0x3f]  ;;  %v1199_v4 = vcombine.high %v1197_v59, %v1197_v59  ;;  %v1399_v33 = vcombine.high %v1391_v63, %v1391_v63 }
 0x259   :  { %1579 = vmatprep.mubr.f32.mxu0 %v2321_v0  ;;  %v2534_v9 = vld [vmem:[#allocation2] sm:$0x3f]  ;;  %v1700_v12 = vrot.slane %v1691_v8, %v2383_v13  ;;  %v1398_v40 = vrot.slane %v1384_v31, %v2383_v13  ;;  %v1501_v42 = vrot.slane %v1487_v35, %v2383_v13  ;;  %v1693_v58 = vcombine.high %v1691_v8, %v1691_v8 }
 0x25a   :  { %v1803_v14 = vrot.slane %v2534_v9, %v2383_v13  ;;  %v2540_v15 = vld [vmem:[#allocation2] sm:$0x3f]  ;;  %v1213_v26 = vrot.slane %v1199_v4, %v2383_v13  ;;  %v1605_v54 = vcombine.high %v1597_v7, %v1597_v7 }
 0x25b   :  { %1503 = vrot.lane.b32.xlu0 %v1494_v5, %s2326_s29  ;;  %v2546_v22 = vrot.slane %v2540_v15, %v2383_v13  ;;  %v1708_v61 = vcombine.high %v1700_v12, %v1700_v12  ;;  %v1899_v63 = vcombine.high %v2540_v15, %v2540_v15  ;;  %v2000_v1 = vld [vmem:[#allocation2] sm:$0x3f] }
 0x25c   :  { %1606 = vrot.lane.b32.xlu1 %v1597_v7, %s2334_s10  ;;  %v256_v10 = vpop.f32.mrf.mxu1  ;;  %v1811_v62 = vcombine.high %v1803_v14, %v1803_v14  ;;  %v2009_v7 = vrot.slane %v2000_v1, %v2383_v13 }
 0x25d   :  { %v343_v18 = vadd.f32 %v342_v45, %v256_v10  ;;  %v1914_v8 = vcombine.high %v2546_v22, %v2546_v22 }
 0x25e   :  { %v258_v17 = vpop.f32.mrf.mxu1  ;;  %v2017_v10 = vcombine.high %v2009_v7, %v2009_v7 }
 0x25f   :  { %1709 = vrot.lane.b32.xlu0 %v1700_v12, %s2325_s28  ;;  %v345_v24 = vadd.f32 %v344_v46, %v258_v17 }
 0x260   :  { %1812 = vrot.lane.b32.xlu1 %v1803_v14, %s2335_s11  ;;  %v448_v20 = vpop.f32.mrf.mxu1 }
 0x261   :  { %v453_v25 = vadd.f32 %v448_v20, %v343_v18 }
 0x262   :  { %v450_v27 = vpop.f32.mrf.mxu1 }
 0x263   :  { %1915 = vrot.lane.b32.xlu0 %v2546_v22, %s2327_s30  ;;  %v454_v28 = vadd.f32 %v450_v27, %v345_v24  ;;  %v561_v29 = vadd.f32 %v556_v47, %v453_v25 }
 0x264   :  { %1219 = vrot.lane.b32.xlu1 %v1213_v26, %s2331_s7  ;;  %v664_v30 = vpop.f32.mrf.mxu1 }
 0x265   :  { %v669_v32 = vadd.f32 %v664_v30, %v561_v29  ;;  %v562_v34 = vadd.f32 %v558_v48, %v454_v28  ;;  %v1502_v48 = vcombine.high %v1494_v5, %v1494_v5  ;;  %v1913_v5 = vrot.slane %v1899_v63, %v2383_v13 }
 0x266   :  { %v666_v36 = vpop.f32.mrf.mxu1 }
 0x267   :  { %1217 = vrot.lane.b32.xlu0 %v1214_v3, %s2331_s7  ;;  %v670_v37 = vadd.f32 %v666_v36, %v562_v34  ;;  %v777_v38 = vadd.f32 %v772_v49, %v669_v32  ;;  %v1590_v49 = vcombine.high %v2523_v2, %v2523_v2 }
 0x268   :  { %1402 = vrot.lane.b32.xlu1 %v1399_v33, %s2329_s5  ;;  %v880_v39 = vpop.f32.mrf.mxu1 }
 0x269   :  { %v885_v41 = vadd.f32 %v880_v39, %v777_v38  ;;  %v778_v43 = vadd.f32 %v774_v50, %v670_v37  ;;  %v1604_v60 = vrot.slane %v1590_v49, %v2383_v13 }
 0x26a   :  { %v882_v44 = vpop.f32.mrf.mxu1 }
 0x26b   :  { %1404 = vrot.lane.b32.xlu0 %v1398_v40, %s2329_s5  ;;  %v886_v45 = vadd.f32 %v882_v44, %v778_v43  ;;  %v993_v46 = vadd.f32 %v2515_v51, %v885_v41  ;;  %v1707_v51 = vrot.slane %v1693_v58, %v2383_v13 }
 0x26c   :  { %1507 = vrot.lane.b32.xlu1 %v1501_v42, %s2326_s29  ;;  %v1096_v47 = vpop.f32.mrf.mxu1 }
 0x26d   :  { %v1101_v53 = vadd.f32 %v1096_v47, %v993_v46  ;;  %v994_v55 = vadd.f32 %v2517_v52, %v886_v45  ;;  %v1796_v52 = vcombine.high %v2534_v9, %v2534_v9  ;;  %v2002_v9 = vcombine.high %v2000_v1, %v2000_v1 }
 0x26e   :  { %v1098_v50 = vpop.f32.mrf.mxu1 }
 0x26f   :  { %1505 = vrot.lane.b32.xlu0 %v1502_v48, %s2326_s29  ;;  %1103 = vst [vmem:[#allocation9] sm:$0xff] %v1101_v53  ;;  %v1102_v59 = vadd.f32 %v1098_v50, %v994_v55  ;;  %v1810_v2 = vrot.slane %v1796_v52, %v2383_v13  ;;  %v2016_v12 = vrot.slane %v2002_v9, %v2383_v13 }
 0x270   :  { %1608 = vrot.lane.b32.xlu1 %v1605_v54, %s2334_s10 }
 0x271   :  { %1104 = vst [vmem:[#allocation9 + $0x8] sm:$0xff] %v1102_v59 }
 0x273   :  { %1610 = vrot.lane.b32.xlu0 %v1604_v60, %s2334_s10 }
 0x274   :  { %1713 = vrot.lane.b32.xlu1 %v1707_v51, %s2325_s28 }
 0x277   :  { %1711 = vrot.lane.b32.xlu0 %v1708_v61, %s2325_s28 }
 0x278   :  { %1814 = vrot.lane.b32.xlu1 %v1811_v62, %s2335_s11 }
 0x27b   :  { %1816 = vrot.lane.b32.xlu0 %v1810_v2, %s2335_s11 }
 0x27c   :  { %1919 = vrot.lane.b32.xlu1 %v1913_v5, %s2327_s30 }
 0x27f   :  { %1917 = vrot.lane.b32.xlu0 %v1914_v8, %s2327_s30 }
 0x280   :  { %2020 = vrot.lane.b32.xlu1 %v2017_v10, %s2336_s12 }
 0x283   :  { %2022 = vrot.lane.b32.xlu0 %v2016_v12, %s2336_s12 }
 0x284   :  { %2018 = vrot.lane.b32.xlu1 %v2009_v7, %s2336_s12 }
 0x2c9   :  { %v1216_v14 = vpop.permute.xlu0 %1215 }
 0x2ca   :  { %v1401_v15 = vpop.permute.xlu1 %1400 }
 0x2cd   :  { %v1504_v4 = vpop.permute.xlu0 %1503 }
 0x2ce   :  { %v1607_v17 = vpop.permute.xlu1 %1606 }
 0x2d1   :  { %v1710_v18 = vpop.permute.xlu0 %1709 }
 0x2d2   :  { %v1813_v20 = vpop.permute.xlu1 %1812 }
 0x2d5   :  { %v1916_v24 = vpop.permute.xlu0 %1915 }
 0x2d6   :  { %v1220_v22 = vpop.permute.xlu1 %1219 }
 0x2d9   :  { %v1218_v25 = vpop.permute.xlu0 %1217 }
 0x2da   :  { %v1221_v26 = vsel %vm179_vm8, %v1216_v14, %v1218_v25  ;;  %v1222_v27 = vsel %vm179_vm8, %v1218_v25, %v1220_v22  ;;  %v1403_v28 = vpop.permute.xlu1 %1402 }
 0x2db   :  { %2160 = vmatprep.subr.msk.mxu1 %vm185_vm3, %v1222_v27  ;;  %v1406_v3 = vsel %vm373_vm9, %v1401_v15, %v1403_v28 }
 0x2dc   :  { %2161 = vmatpush1.msk.msra.mxu1 %vm185_vm3, %v1221_v26 }
 0x2dd   :  { %v1405_v13 = vpop.permute.xlu0 %1404  ;;  %2162 = vmatmul.mubr.msk.f32.vlgmr.msra.gmra.mxu1 %vm182_vm4, %v2457_v11 }
 0x2de   :  { %v1407_v29 = vsel %vm373_vm9, %v1403_v28, %v1405_v13  ;;  %v1508_v30 = vpop.permute.xlu1 %1507  ;;  %1476 = vmatprep.mubr.f32.mxu1 %v2321_v0 }
 0x2df   :  { %2167 = vmatprep.subr.msk.mxu1 %vm185_vm3, %v1407_v29 }
 0x2e0   :  { %2168 = vmatpush1.msk.msra.mxu1 %vm185_vm3, %v1406_v3 }
 0x2e1   :  { %v1506_v31 = vpop.permute.xlu0 %1505  ;;  %2169 = vmatmul.mubr.msk.f32.vlgmr.msra.gmra.mxu1 %vm182_vm4, %v2462_v16 }
 0x2e2   :  { %v1509_v32 = vsel %vm481_vm5, %v1504_v4, %v1506_v31  ;;  %v1510_v33 = vsel %vm481_vm5, %v1506_v31, %v1508_v30  ;;  %v1609_v11 = vpop.permute.xlu1 %1608  ;;  %1682 = vmatprep.mubr.f32.mxu1 %v2321_v0 }
 0x2e3   :  { %2170 = vmatprep.subr.msk.mxu0 %vm185_vm3, %v1510_v33  ;;  %v1612_v16 = vsel %vm589_vm10, %v1607_v17, %v1609_v11 }
 0x2e4   :  { %2171 = vmatpush1.msk.msra.mxu0 %vm185_vm3, %v1509_v32 }
 0x2e5   :  { %v1611_v34 = vpop.permute.xlu0 %1610  ;;  %2172 = vmatmul.mubr.msk.f32.vlgmr.msra.gmra.mxu0 %vm182_vm4, %v2438_v56 }
 0x2e6   :  { %v1613_v35 = vsel %vm589_vm10, %v1609_v11, %v1611_v34  ;;  %v1714_v36 = vpop.permute.xlu1 %1713  ;;  %1785 = vmatprep.mubr.f32.mxu0 %v2321_v0 }
 0x2e7   :  { %2173 = vmatprep.subr.msk.mxu1 %vm185_vm3, %v1613_v35 }
 0x2e8   :  { %2174 = vmatpush1.msk.msra.mxu1 %vm185_vm3, %v1612_v16 }
 0x2e9   :  { %v1712_v37 = vpop.permute.xlu0 %1711  ;;  %2175 = vmatmul.mubr.msk.f32.vlgmr.msra.gmra.mxu1 %vm182_vm4, %v2471_v19 }
 0x2ea   :  { %v1715_v38 = vsel %vm697_vm6, %v1710_v18, %v1712_v37  ;;  %v1716_v39 = vsel %vm697_vm6, %v1712_v37, %v1714_v36  ;;  %v1815_v56 = vpop.permute.xlu1 %1814  ;;  %1888 = vmatprep.mubr.f32.mxu1 %v2321_v0 }
 0x2eb   :  { %2176 = vmatprep.subr.msk.mxu0 %vm185_vm3, %v1716_v39  ;;  %v1818_v19 = vsel %vm805_vm11, %v1813_v20, %v1815_v56 }
 0x2ec   :  { %2177 = vmatpush1.msk.msra.mxu0 %vm185_vm3, %v1715_v38 }
 0x2ed   :  { %v1817_v40 = vpop.permute.xlu0 %1816  ;;  %2178 = vmatmul.mubr.msk.f32.vlgmr.msra.gmra.mxu0 %vm182_vm4, %v2440_v57 }
 0x2ee   :  { %v1819_v41 = vsel %vm805_vm11, %v1815_v56, %v1817_v40  ;;  %v1920_v42 = vpop.permute.xlu1 %1919  ;;  %1991 = vmatprep.mubr.f32.mxu0 %v2321_v0 }
 0x2ef   :  { %2179 = vmatprep.subr.msk.mxu1 %vm185_vm3, %v1819_v41 }
 0x2f0   :  { %2180 = vmatpush1.msk.msra.mxu1 %vm185_vm3, %v1818_v19 }
 0x2f1   :  { %v1918_v43 = vpop.permute.xlu0 %1917  ;;  %2181 = vmatmul.mubr.msk.f32.vlgmr.msra.gmra.mxu1 %vm182_vm4, %v2476_v21 }
 0x2f2   :  { %v1921_v44 = vsel %vm913_vm7, %v1916_v24, %v1918_v43  ;;  %v1922_v45 = vsel %vm913_vm7, %v1918_v43, %v1920_v42  ;;  %v2021_v57 = vpop.permute.xlu1 %2020  ;;  %2094 = vmatprep.mubr.f32.mxu1 %v2321_v0 }
 0x2f3   :  { %2182 = vmatprep.subr.msk.mxu0 %vm185_vm3, %v1922_v45 }
 0x2f4   :  { %2183 = vmatpush1.msk.msra.mxu0 %vm185_vm3, %v1921_v44 }
 0x2f5   :  { %v2023_v46 = vpop.permute.xlu0 %2022  ;;  %2184 = vmatmul.mubr.msk.f32.vlgmr.msra.gmra.mxu0 %vm182_vm4, %v2448_v6 }
 0x2f6   :  { %v2025_v47 = vsel %vm1021_vm12, %v2021_v57, %v2023_v46  ;;  %v2019_v48 = vpop.permute.xlu1 %2018 }
 0x2f7   :  { %v2024_v21 = vsel %vm1021_vm12, %v2019_v48, %v2021_v57  ;;  %2185 = vmatprep.subr.msk.mxu1 %vm185_vm3, %v2025_v47 }
 0x2f8   :  { %2186 = vmatpush1.msk.msra.mxu1 %vm185_vm3, %v2024_v21 }
 0x2f9   :  { %2187 = vmatmul.mubr.msk.f32.vlgmr.msra.gmra.mxu1 %vm182_vm4, %v2478_v23 }
 0x318   :  { %v1377_v53 = vpop.f32.mrf.mxu0 }
 0x31a   :  { %v1379_v55 = vpop.f32.mrf.mxu0 }
 0x39d   :  { %v1293_v0 = vpop.f32.mrf.mxu1 }
 0x39e   :  { %v1378_v59 = vadd.f32 %v1377_v53, %v1293_v0 }
 0x39f   :  { %v1295_v49 = vpop.f32.mrf.mxu1 }
 0x3a0   :  { %v1380_v51 = vadd.f32 %v1379_v55, %v1295_v49 }
 0x3a1   :  { %v1478_v54 = vpop.f32.mrf.mxu1 }
 0x3a2   :  { %v1483_v61 = vadd.f32 %v1478_v54, %v1378_v59 }
 0x3a3   :  { %v1480_v58 = vpop.f32.mrf.mxu1 }
 0x3a4   :  { %v1484_v63 = vadd.f32 %v1480_v58, %v1380_v51 }
 0x3a5   :  { %v1581_v50 = vpop.f32.mrf.mxu0 }
 0x3a6   :  { %v1586_v1 = vadd.f32 %v1581_v50, %v1483_v61 }
 0x3a7   :  { %v1583_v60 = vpop.f32.mrf.mxu0 }
 0x3a8   :  { %v1587_v5 = vadd.f32 %v1583_v60, %v1484_v63 }
 0x3a9   :  { %v1684_v6 = vpop.f32.mrf.mxu1 }
 0x3aa   :  { %v1689_v7 = vadd.f32 %v1684_v6, %v1586_v1 }
 0x3ab   :  { %v1686_v52 = vpop.f32.mrf.mxu1 }
 0x3ac   :  { %v1690_v8 = vadd.f32 %v1686_v52, %v1587_v5 }
 0x3ad   :  { %v1787_v62 = vpop.f32.mrf.mxu0 }
 0x3ae   :  { %v1792_v9 = vadd.f32 %v1787_v62, %v1689_v7 }
 0x3af   :  { %v1789_v23 = vpop.f32.mrf.mxu0 }
 0x3b0   :  { %v1793_v14 = vadd.f32 %v1789_v23, %v1690_v8 }
 0x3b1   :  { %v1890_v2 = vpop.f32.mrf.mxu1 }
 0x3b2   :  { %v1895_v15 = vadd.f32 %v1890_v2, %v1792_v9 }
 0x3b3   :  { %v1892_v10 = vpop.f32.mrf.mxu1 }
 0x3b4   :  { %v1896_v17 = vadd.f32 %v1892_v10, %v1793_v14 }
 0x3b5   :  { %v1993_v12 = vpop.f32.mrf.mxu0 }
 0x3b6   :  { %v1998_v18 = vadd.f32 %v1993_v12, %v1895_v15 }
 0x3b7   :  { %v1995_v4 = vpop.f32.mrf.mxu0 }
 0x3b8   :  { %v1999_v24 = vadd.f32 %v1995_v4, %v1896_v17 }
 0x3b9   :  { %v2096_v20 = vpop.f32.mrf.mxu1 }
 0x3ba   :  { %v2101_v22 = vadd.f32 %v2096_v20, %v1998_v18 }
 0x3bb   :  { %v2098_v25 = vpop.f32.mrf.mxu1 }
 0x3bc   :  { %2104 = vst [vmem:[#allocation9 + $0x10] sm:$0xff] %v2101_v22  ;;  %v2102_v26 = vadd.f32 %v2098_v25, %v1999_v24 }
 0x3be   :  { %2105 = vst [vmem:[#allocation9 + $0x18] sm:$0xff] %v2102_v26 }
 0x3bf   :  { %2301 = shalt.err (!%p2298_p5)
}
 0x3c0   :  { %s2338_s16 = smov 256   ;;  %s2339_s17 = smov 16  }
 0x3c1   :  { %2117 = dma.vmem_to_hbm [thread:$0]  %s2112_s14, 512, %s2646_s3, [#allocation5], %s2338_s16, %s2338_s16, %s2339_s17  }
 0x3c2   :  { %2314 = dma.done.wait [#allocation5], 512  }
 0x3c3   :  { %2315 = vsyncadd [#allocation5], 4294966784 }
 0x3c4   :  { %2121 = vsyncpa [#allocation4], 1 }
 0x3c5   :  { %2122 = vsyncpa [#allocation7], 1 }
 0x3c6   :  { %2123 = vsyncpa [#allocation5], 1 }

</bundles_post_ra>
